<compile_context>
chip_gen: v6e
topology: v6e:2x2x1
jax: 0.10.0
libtpu: 0.0.40
codegen_flags: <defaults>
</compile_context>

<pallas_src>
import functools

import jax
import jax.numpy as jnp
from jax import lax
from jax.experimental import pallas as pl
from jax.experimental.pallas import tpu as pltpu

_EPS = 1e-8                       # torch.nn.CosineSimilarity default eps
_EPS2 = _EPS * _EPS
_DEFAULT_VMEM = 64 * 1024 * 1024  # conservative fallback (v7x per-core VMEM)


# ----------------------------- small helpers --------------------------------
def _round_up(x, m):
    return ((x + m - 1) // m) * m


def _vmem_capacity_bytes():
    try:
        v = int(pltpu.get_tpu_info().vmem_capacity_bytes)
    except Exception:
        v = _DEFAULT_VMEM
    return max(16 * 1024 * 1024, min(v, 128 * 1024 * 1024))


def _budgets():
    """(per-step block budget, scoped vmem limit) in bytes."""
    vmem = _vmem_capacity_bytes()
    if vmem >= 100 * 1024 * 1024:          # v5e / v6e: 128 MiB -> more slack
        block_budget = (vmem * 3) // 8
    else:                                  # v7x: 64 MiB per core -> conservative
        block_budget = vmem // 4
    vmem_limit = (vmem * 3) // 4
    return block_budget, vmem_limit


def _row_tile(m, bytes_per_row, budget):
    """Row (sublane) tile sized by bytes; full-array block when it fits."""
    max_rows = max(8, budget // max(bytes_per_row, 1))
    if m <= max_rows:
        return m                                   # full dim -> always legal
    gran = 256 if max_rows >= 256 else (128 if max_rows >= 128 else 8)
    return max(gran, (max_rows // gran) * gran)    # ragged last block is fine


# -------------------------------- kernels ------------------------------------
def _rowwise_cosine_kernel(x_ref, y_ref, o_ref, *, inv_temp):
    # x_ref, y_ref: [TM, D] tiles in VMEM; o_ref: [TM, 1]
    x = x_ref[...].astype(jnp.float32)
    y = y_ref[...].astype(jnp.float32)

    dot = jnp.sum(x * y, axis=-1, keepdims=True)
    xx = jnp.sum(x * x, axis=-1, keepdims=True)
    yy = jnp.sum(y * y, axis=-1, keepdims=True)

    # torch semantics: dot / (max(|x|, eps) * max(|y|, eps)).
    # Two rsqrt (EUP slot, free in this DMA-bound kernel) instead of one rsqrt
    # of the product -- the product of two squared f32 norms can overflow.
    inv_x = lax.rsqrt(jnp.maximum(xx, _EPS2))
    inv_y = lax.rsqrt(jnp.maximum(yy, _EPS2))
    o_ref[...] = (dot * inv_x * inv_y * inv_temp).astype(o_ref.dtype)


def _inv_norm_kernel(x_ref, o_ref):
    # x_ref: [TM, D]; o_ref: [TM, 1] = 1 / max(||row||, eps)
    x = x_ref[...].astype(jnp.float32)
    ss = jnp.sum(x * x, axis=-1, keepdims=True)
    o_ref[...] = lax.rsqrt(jnp.maximum(ss, _EPS2))


def _pairwise_cosine_kernel(x_ref, y_ref, ix_ref, iy_ref, o_ref, acc_ref, *,
                            inv_temp):
    # x_ref: [TA, TK], y_ref: [TB, TK] (native dtype -> bf16 stays bf16 on MXU)
    # ix_ref: [TA, 1], iy_ref: [1, TB] precomputed inverse norms (f32)
    # o_ref: [TA, TB]; acc_ref: [TA, TB] f32 scratch accumulator
    k = pl.program_id(2)

    @pl.when(k == 0)
    def _():
        acc_ref[...] = jnp.zeros_like(acc_ref)

    acc_ref[...] += lax.dot_general(
        x_ref[...], y_ref[...],
        dimension_numbers=(((1,), (1,)), ((), ())),
        preferred_element_type=jnp.float32)

    @pl.when(k == pl.num_programs(2) - 1)
    def _():
        scale = ix_ref[...] * iy_ref[...] * inv_temp   # (TA,1)*(1,TB) -> (TA,TB)
        o_ref[...] = (acc_ref[...] * scale).astype(o_ref.dtype)


# ------------------------------- launchers ------------------------------------
def _rowwise_similarity(x2, y2, temp):
    """cos(x2[i], y2[i]) / temp for x2, y2 of identical shape [M, D]."""
    m, d = x2.shape
    if m == 0:
        return jnp.zeros((0,), jnp.float32)

    itemsize = max(jnp.dtype(x2.dtype).itemsize, jnp.dtype(y2.dtype).itemsize)
    budget, vmem_limit = _budgets()
    dp = _round_up(d, 128)  # lane padding in VMEM
    # 2 inputs x 2 pipeline buffers + ~3 f32 upcast temps + lane-padded out block
    bytes_per_row = 4 * dp * itemsize + 12 * dp + 2 * 128 * 4
    tile_m = _row_tile(m, bytes_per_row, budget)

    kernel = functools.partial(_rowwise_cosine_kernel, inv_temp=1.0 / float(temp))
    out = pl.pallas_call(
        kernel,
        out_shape=jax.ShapeDtypeStruct((m, 1), jnp.float32),
        grid_spec=pltpu.PrefetchScalarGridSpec(
            num_scalar_prefetch=0,
            grid=(pl.cdiv(m, tile_m),),
            in_specs=[
                pl.BlockSpec((tile_m, d), lambda i: (i, 0)),
                pl.BlockSpec((tile_m, d), lambda i: (i, 0)),
            ],
            out_specs=pl.BlockSpec((tile_m, 1), lambda i: (i, 0)),
        ),
        compiler_params=pltpu.CompilerParams(
            dimension_semantics=("parallel",),
            vmem_limit_bytes=int(vmem_limit),
        ),
    )(x2, y2)
    return out[:, 0]


def _inv_norms(x2):
    """Per-row 1 / max(||x||, eps) for x2: [M, D] -> [M, 1] f32."""
    m, d = x2.shape
    itemsize = jnp.dtype(x2.dtype).itemsize
    budget, vmem_limit = _budgets()
    dp = _round_up(d, 128)
    bytes_per_row = 2 * dp * itemsize + 8 * dp + 2 * 128 * 4
    tile_m = _row_tile(m, bytes_per_row, budget)

    return pl.pallas_call(
        _inv_norm_kernel,
        out_shape=jax.ShapeDtypeStruct((m, 1), jnp.float32),
        grid_spec=pltpu.PrefetchScalarGridSpec(
            num_scalar_prefetch=0,
            grid=(pl.cdiv(m, tile_m),),
            in_specs=[pl.BlockSpec((tile_m, d), lambda i: (i, 0))],
            out_specs=pl.BlockSpec((tile_m, 1), lambda i: (i, 0)),
        ),
        compiler_params=pltpu.CompilerParams(
            dimension_semantics=("parallel",),
            vmem_limit_bytes=int(vmem_limit),
        ),
    )(x2)


def _pairwise_tiles(a, b, h, itemsize, budget):
    """(ta, tb, tk): output tile up to 512x512, K chunk that divides H."""
    ta = min(a, 512)
    tb = min(b, 512)
    # K (contraction) chunk: must divide H exactly (no ragged K -> no garbage
    # contributions in the accumulator); otherwise use the full H.
    if h % 128 == 0 and h > 1024:
        tk = 128
        for cand in (1024, 896, 768, 640, 512, 384, 256):
            if h % cand == 0:
                tk = cand
                break
    else:
        tk = h
    kp = _round_up(tk, 128)

    def need(ta_, tb_):
        tap = _round_up(ta_, 8)
        tbp = _round_up(tb_, 128)
        return (2 * (tap + tbp) * kp * itemsize   # double-buffered x / y blocks
                + 4 * tap * tbp * 4               # acc scratch + out blocks + temp
                + 64 * 1024)                      # inv-norm blocks + slack

    while need(ta, tb) > budget and (ta > 64 or tb > 128):
        if ta >= tb and ta > 64:
            ta = max(64, ((ta // 2) // 8) * 8)
        elif tb > 128:
            tb = max(128, ((tb // 2) // 128) * 128)
        else:
            break
    return ta, tb, tk


def _pairwise_similarity(xr, yr, temp):
    """cos(xr[i], yr[j]) / temp for xr:[A,H], yr:[B,H] -> [A,B] (MXU path)."""
    a, h = xr.shape
    b = yr.shape[0]
    if a == 0 or b == 0:
        return jnp.zeros((a, b), jnp.float32)

    dt = jnp.promote_types(xr.dtype, yr.dtype)
    if xr.dtype != dt:
        xr = xr.astype(dt)
    if yr.dtype != dt:
        yr = yr.astype(dt)
    itemsize = jnp.dtype(dt).itemsize

    budget, vmem_limit = _budgets()
    ta, tb, tk = _pairwise_tiles(a, b, h, itemsize, budget)

    # Per-row inverse norms, computed once (not per tile visit).
    inv_x = _inv_norms(xr)                  # (A, 1) f32
    inv_y = _inv_norms(yr).reshape(1, b)    # (1, B) f32 (lane-oriented for cols)

    kernel = functools.partial(_pairwise_cosine_kernel, inv_temp=1.0 / float(temp))
    out = pl.pallas_call(
        kernel,
        out_shape=jax.ShapeDtypeStruct((a, b), jnp.float32),
        grid_spec=pltpu.PrefetchScalarGridSpec(
            num_scalar_prefetch=0,
            grid=(pl.cdiv(a, ta), pl.cdiv(b, tb), pl.cdiv(h, tk)),
            in_specs=[
                pl.BlockSpec((ta, tk), lambda i, j, k: (i, k)),
                pl.BlockSpec((tb, tk), lambda i, j, k: (j, k)),
                pl.BlockSpec((ta, 1), lambda i, j, k: (i, 0)),
                pl.BlockSpec((1, tb), lambda i, j, k: (0, j)),
            ],
            out_specs=pl.BlockSpec((ta, tb), lambda i, j, k: (i, j)),
            scratch_shapes=[pltpu.VMEM((ta, tb), jnp.float32)],
        ),
        compiler_params=pltpu.CompilerParams(
            dimension_semantics=("parallel", "parallel", "arbitrary"),
            vmem_limit_bytes=int(vmem_limit),
        ),
    )(xr, yr, inv_x, inv_y)
    return out


# ------------------------------- public API -----------------------------------
def similarity(x, y, temp=0.05):
    """Cosine similarity along the last axis divided by temp (Pallas TPU)."""
    x = jnp.asarray(x)
    y = jnp.asarray(y)
    if x.ndim < 1 or y.ndim < 1 or x.shape[-1] != y.shape[-1]:
        raise ValueError("feature (last) dimensions must match")
    d = x.shape[-1]
    out_batch = jnp.broadcast_shapes(x.shape[:-1], y.shape[:-1])
    nb = len(out_batch)

    total = 1
    for s in out_batch:
        total *= s
    if total == 0 or d == 0:
        return jnp.zeros(out_batch, jnp.float32)

    # Rank-align the batch shapes (numpy/torch broadcasting rules).
    xs = (1,) * (nb - (x.ndim - 1)) + tuple(x.shape[:-1])
    ys = (1,) * (nb - (y.ndim - 1)) + tuple(y.shape[:-1])
    x_axes = [i for i in range(nb) if xs[i] > 1]
    y_axes = [i for i in range(nb) if ys[i] > 1]
    disjoint = all(xs[i] == 1 or ys[i] == 1 for i in range(nb))

    if xs == ys:
        # Same (broadcast) batch shape: no broadcast materialization needed.
        return _rowwise_similarity(x.reshape(-1, d), y.reshape(-1, d),
                                   temp).reshape(out_batch)

    outer_ok = disjoint and (
        not x_axes or not y_axes
        or max(x_axes) < min(y_axes) or max(y_axes) < min(x_axes))
    if outer_ok:
        # Outer-product broadcast (SimCSE-style, or single-vector-vs-batch):
        # never materialize the broadcast; run the pairwise MXU kernel.
        xr = x.reshape(-1, d)
        yr = y.reshape(-1, d)
        x_first = (not x_axes) or (not y_axes) or (max(x_axes) < min(y_axes))
        if x_first:
            pair = _pairwise_similarity(xr, yr, temp)
        else:
            pair = _pairwise_similarity(yr, xr, temp)   # cosine is symmetric
        return pair.reshape(out_batch)

    # General mixed broadcast (rare): materialize, keep native dtype.
    xb = jnp.broadcast_to(x, out_batch + (d,)).reshape(-1, d)
    yb = jnp.broadcast_to(y, out_batch + (d,)).reshape(-1, d)
    return _rowwise_similarity(xb, yb, temp).reshape(out_batch)


# ------------------------------- reference ------------------------------------
def _reference(x, y, temp=0.05):
    xb, yb = jnp.broadcast_arrays(x, y)
    xb = xb.astype(jnp.float32)
    yb = yb.astype(jnp.float32)
    dot = jnp.sum(xb * yb, axis=-1)
    xn = jnp.maximum(jnp.linalg.norm(xb, axis=-1), _EPS)
    yn = jnp.maximum(jnp.linalg.norm(yb, axis=-1), _EPS)
    return (dot / (xn * yn)) / temp


if __name__ == "__main__":
    key = jax.random.PRNGKey(0)
    k1, k2, k3, k4 = jax.random.split(key, 4)

    batch, seq, hidden = 2, 8, 32
    x = jax.random.normal(k1, (batch, seq, hidden), dtype=jnp.float32)
    y = jax.random.normal(k2, (batch, seq, hidden), dtype=jnp.float32)

    # 1) Same-shape (aligned) case -> row-wise kernel.
    out = jax.block_until_ready(similarity(x, y, temp=0.05))
    ref = _reference(x, y, temp=0.05)
    assert out.shape == (batch, seq)
    assert jnp.allclose(out, ref, atol=1e-4, rtol=1e-4)

    # 2) SimCSE-style broadcast: (B,1,H) vs (1,B,H) -> (B,B) -> pairwise MXU kernel.
    xs_ = x[:, 0, :][:, None, :]
    ys_ = y[:, 0, :][None, :, :]
    out2 = jax.block_until_ready(similarity(xs_, ys_, temp=0.05))
    ref2 = _reference(xs_, ys_, temp=0.05)
    assert out2.shape == (batch, batch)
    assert jnp.allclose(out2, ref2, atol=1e-4, rtol=1e-4)

    # 3) bf16 aligned: inputs stay bf16 in HBM; kernel upcasts on VMEM tiles.
    xb16 = x.astype(jnp.bfloat16)
    yb16 = y.astype(jnp.bfloat16)
    out3 = jax.block_until_ready(similarity(xb16, yb16, temp=0.05))
    ref3 = _reference(xb16.astype(jnp.float32), yb16.astype(jnp.float32), temp=0.05)
    assert jnp.allclose(out3, ref3, atol=5e-2, rtol=5e-2)

    # 4) bf16 pairwise: native bf16 operands on the MXU, f32 accumulation.
    out4 = jax.block_until_ready(
        similarity(xb16[:, 0, :][:, None, :], yb16[:, 0, :][None, :, :], temp=0.05))
    ref4 = _reference(xb16[:, 0, :][:, None, :].astype(jnp.float32),
                      yb16[:, 0, :][None, :, :].astype(jnp.float32), temp=0.05)
    assert jnp.allclose(out4, ref4, atol=5e-2, rtol=5e-2)

    # 5) Large hidden dim -> exercises the K-tiled accumulator path (tk=1024, nk=2).
    x5 = jax.random.normal(k3, (4, 1, 2048), dtype=jnp.float32)
    y5 = jax.random.normal(k4, (1, 6, 2048), dtype=jnp.float32)
    out5 = jax.block_until_ready(similarity(x5, y5, temp=0.05))
    ref5 = _reference(x5, y5, temp=0.05)
    assert out5.shape == (4, 6)
    assert jnp.allclose(out5, ref5, atol=2e-3, rtol=2e-3)

    # 6) Single vector vs batch: routed through the pairwise kernel with A=1
    #    (no jnp.broadcast_to materialization).
    xv = x[0, 0, :]                          # (hidden,)
    out6 = jax.block_until_ready(similarity(xv, y, temp=0.05))
    ref6 = _reference(xv, y, temp=0.05)
    assert out6.shape == (batch, seq)
    assert jnp.allclose(out6, ref6, atol=1e-4, rtol=1e-4)

    print("KERNEL_OK")
</pallas_src>

<mosaic_0001>
module attributes {stable_mosaic.version = 11 : i64} {
  func.func @_rowwise_cosine_kernel(%arg0: i32, %arg1: memref<16x32xf32, #tpu.memory_space<vmem>>, %arg2: memref<16x32xf32, #tpu.memory_space<vmem>>, %arg3: memref<16x1xf32, #tpu.memory_space<vmem>>) attributes {dimension_semantics = [#tpu.dimension_semantics<parallel>], iteration_bounds = array<i64: 1>, scalar_prefetch = 0 : i64, scratch_operands = 0 : i64, tpu.core_type = #tpu.core_type<tc>, window_params = [{transform_indices = @transform_0, window_bounds = array<i64: 16, 32>}, {transform_indices = @transform_1, window_bounds = array<i64: 16, 32>}, {transform_indices = @transform_2, window_bounds = array<i64: 16, 1>}]} {
    %c0 = arith.constant 0 : index
    %c0_0 = arith.constant 0 : index
    %0 = vector.load %arg1[%c0, %c0_0] : memref<16x32xf32, #tpu.memory_space<vmem>>, vector<16x32xf32>
    %c0_1 = arith.constant 0 : index
    %c0_2 = arith.constant 0 : index
    %1 = vector.load %arg2[%c0_1, %c0_2] : memref<16x32xf32, #tpu.memory_space<vmem>>, vector<16x32xf32>
    %2 = arith.mulf %0, %1 : vector<16x32xf32>
    %cst = arith.constant dense<0.000000e+00> : vector<16xf32>
    %3 = vector.multi_reduction <add>, %2, %cst [1] : vector<16x32xf32> to vector<16xf32>
    %4 = vector.shape_cast %3 : vector<16xf32> to vector<16x1xf32>
    %5 = arith.mulf %0, %0 : vector<16x32xf32>
    %cst_3 = arith.constant dense<0.000000e+00> : vector<16xf32>
    %6 = vector.multi_reduction <add>, %5, %cst_3 [1] : vector<16x32xf32> to vector<16xf32>
    %7 = vector.shape_cast %6 : vector<16xf32> to vector<16x1xf32>
    %8 = arith.mulf %1, %1 : vector<16x32xf32>
    %cst_4 = arith.constant dense<0.000000e+00> : vector<16xf32>
    %9 = vector.multi_reduction <add>, %8, %cst_4 [1] : vector<16x32xf32> to vector<16xf32>
    %10 = vector.shape_cast %9 : vector<16xf32> to vector<16x1xf32>
    %cst_5 = arith.constant 1.000000e-16 : f32
    %11 = vector.broadcast %cst_5 : f32 to vector<16x1xf32>
    %12 = arith.maximumf %7, %11 : vector<16x1xf32>
    %13 = math.rsqrt %12 : vector<16x1xf32>
    %cst_6 = arith.constant 1.000000e-16 : f32
    %14 = vector.broadcast %cst_6 : f32 to vector<16x1xf32>
    %15 = arith.maximumf %10, %14 : vector<16x1xf32>
    %16 = math.rsqrt %15 : vector<16x1xf32>
    %17 = arith.mulf %4, %13 : vector<16x1xf32>
    %18 = arith.mulf %17, %16 : vector<16x1xf32>
    %cst_7 = arith.constant 2.000000e+01 : f32
    %19 = vector.broadcast %cst_7 : f32 to vector<16x1xf32>
    %20 = arith.mulf %18, %19 : vector<16x1xf32>
    %c0_8 = arith.constant 0 : index
    %c0_9 = arith.constant 0 : index
    %21 = vector.load %arg3[%c0_8, %c0_9] : memref<16x1xf32, #tpu.memory_space<vmem>>, vector<16x1xf32>
    tpu.vector_store %arg3[%c0_8, %c0_9], %20 {strides = array<i32>} : memref<16x1xf32, #tpu.memory_space<vmem>>, vector<16x1xf32>,
    return
  }
  func.func @transform_0(%arg0: i32) -> (i32, i32) {
    %c0_i32 = arith.constant 0 : i32
    %c0_i32_0 = arith.constant 0 : i32
    return %arg0, %c0_i32 : i32, i32
  }
  func.func @transform_1(%arg0: i32) -> (i32, i32) {
    %c0_i32 = arith.constant 0 : i32
    %c0_i32_0 = arith.constant 0 : i32
    return %arg0, %c0_i32 : i32, i32
  }
  func.func @transform_2(%arg0: i32) -> (i32, i32) {
    %c0_i32 = arith.constant 0 : i32
    %c0_i32_0 = arith.constant 0 : i32
    return %arg0, %c0_i32 : i32, i32
  }
}

</mosaic_0001>

<bundles_post_ra>
// kernel: tpu_custom_call.1
= control target key start
LH: loop header
LB: loop body
LE: loop exit
PB: predicated region body
PF: predicated region fallthrough
CT: control target
= control target key end

     0   :  { %7 = vsyncpa [#allocation3], 0  ;;  %s184_s0 = inlined_call_operand.hbm [shape: f32[16,32], index: 0, kind: input, shape index: {}]   ;;  %s185_s1 = inlined_call_operand.hbm [shape: f32[16,32], index: 1, kind: input, shape index: {}]   ;;  %s186_s2 = inlined_call_operand.vmem [shape: f32[16,1], index: 2, kind: output, shape index: {}]  }
   0x1   :  { %8 = vsyncpa [#allocation5], 0  ;;  %s147_s9 = smov [#allocation2]  }
   0x2   :  { %s14_s10 = sshll.u32 %s147_s9, 4  ;;  %s15_s10 = int_to_ptr.vmem [resolvable:$true] %s14_s10 }
   0x3   :  { %s111_s11 = scalar_lea.vmem %s15_s10, 256  ;;  %p116_p1 = scmp.lt.s32.totalorder %s15_s10, %s15_s10 }
   0x4   :  { %p112_p0 = scmp.ne.s32.totalorder %s15_s10, %s111_s11  ;;  %p117_p2 = scmp.lt.s32.totalorder %s111_s11, %s111_s11 }
   0x6   :  { %p118_p3 = por %p117_p2, %p116_p1 }
   0x8   :  { %p119_p4 = pnand %p118_p3, %p112_p0 }
   0xa   :  { %122 = shalt.err (!%p119_p4)
}
   0xb   :  { %s148_s12 = smov 128   ;;  %s149_s13 = smov 8  }
   0xc   :  { %20 = dma.hbm_to_vmem [thread:$0]  %s184_s0, 256, %s15_s10, [#allocation3], %s148_s12, %s148_s12, %s149_s13  }
   0xd   :  { %s150_s16 = smov [#allocation4]  }
   0xe   :  { %s26_s17 = sshll.u32 %s150_s16, 4  ;;  %s27_s17 = int_to_ptr.vmem [resolvable:$true] %s26_s17 }
   0xf   :  { %s131_s18 = scalar_lea.vmem %s27_s17, 256  ;;  %p136_p6 = scmp.lt.s32.totalorder %s27_s17, %s27_s17 }
  0x10   :  { %p132_p5 = scmp.ne.s32.totalorder %s27_s17, %s131_s18  ;;  %p137_p7 = scmp.lt.s32.totalorder %s131_s18, %s131_s18 }
  0x12   :  { %p138_p8 = por %p137_p7, %p136_p6 }
  0x14   :  { %p139_p9 = pnand %p138_p8, %p132_p5 }
  0x16   :  { %142 = shalt.err (!%p139_p9)
}
  0x17   :  { %32 = dma.hbm_to_vmem [thread:$0]  %s185_s1, 256, %s27_s17, [#allocation5], %s148_s12, %s148_s12, %s149_s13  }
  0x18   :  { %143 = dma.done.wait [#allocation3], 256  }
  0x19   :  { %144 = vsyncadd [#allocation3], 4294967040 }
  0x1a   :  { %145 = dma.done.wait [#allocation5], 256  }
  0x1b   :  { %146 = vsyncadd [#allocation5], 4294967040  ;;  %v39_v0 = vld [vmem:[#allocation2] sm:$0xff]  ;;  %vm45_vm0 = vcmask 261120   ;;  %v41_v1 = vld [vmem:[#allocation4] sm:$0xff]  ;;  %vm82_vm1 = vcmask 7168  }
  0x1c   :  { %v40_v2 = vld [vmem:[#allocation2 + $0x8] sm:$0xff]  ;;  %v52_v3 = vmul.f32 %v39_v0, %v39_v0  ;;  %v60_v4 = vmul.f32 %v41_v1, %v41_v1  ;;  %v42_v6 = vld [vmem:[#allocation4 + $0x8] sm:$0xff]  ;;  %v43_v12 = vmul.f32 %v41_v1, %v39_v0 }
  0x1d   :  { %v53_v5 = vmul.f32 %v40_v2, %v40_v2  ;;  %v61_v7 = vmul.f32 %v42_v6, %v42_v6  ;;  %v44_v13 = vmul.f32 %v42_v6, %v40_v2 }
  0x1e   :  { %v54_v8 = vsel %vm45_vm0, %v52_v3, 0.0  ;;  %v62_v9 = vsel %vm45_vm0, %v60_v4, 0.0  ;;  %v46_v14 = vsel %vm45_vm0, %v43_v12, 0.0 }
  0x1f   :  { %55 = vadd.xlane.f32.xlu0 %v54_v8  ;;  %63 = vadd.xlane.f32.xlu1 %v62_v9  ;;  %v57_v10 = vsel %vm45_vm0, %v53_v5, 0.0  ;;  %v65_v11 = vsel %vm45_vm0, %v61_v7, 0.0  ;;  %v49_v15 = vsel %vm45_vm0, %v44_v13, 0.0 }
  0x23   :  { %58 = vadd.xlane.f32.xlu0 %v57_v10  ;;  %66 = vadd.xlane.f32.xlu1 %v65_v11 }
  0x27   :  { %47 = vadd.xlane.f32.xlu0 %v46_v14  ;;  %50 = vadd.xlane.f32.xlu1 %v49_v15 }
  0xa8   :  { %v56_v16 = vpop.xlane.xlu0 %55  ;;  %v64_v17 = vpop.xlane.xlu1 %63 }
  0xa9   :  { %v68_v18 = vmax.f32 %v56_v16, 1e-16  ;;  %v72_v19 = vmax.f32 %v64_v17, 1e-16 }
  0xab   :  { %95 = vrsqrt.f32 %v68_v18 }
  0xac   :  { %97 = vrsqrt.f32 %v72_v19  ;;  %v59_v20 = vpop.xlane.xlu0 %58  ;;  %v67_v21 = vpop.xlane.xlu1 %66 }
  0xad   :  { %v69_v22 = vmax.f32 %v59_v20, 1e-16  ;;  %v73_v23 = vmax.f32 %v67_v21, 1e-16 }
  0xaf   :  { %99 = vrsqrt.f32 %v69_v22 }
  0xb0   :  { %101 = vrsqrt.f32 %v73_v23  ;;  %v48_v24 = vpop.xlane.xlu0 %47  ;;  %v51_v28 = vpop.xlane.xlu1 %50 }
  0xb8   :  { %v96_v25 = vpop.eup %95 }
  0xb9   :  { %v98_v26 = vpop.eup %97  ;;  %v76_v27 = vmul.f32 %v96_v25, %v48_v24 }
  0xbb   :  { %v78_v29 = vmul.f32 %v98_v26, %v76_v27 }
  0xbc   :  { %v100_v30 = vpop.eup %99 }
  0xbd   :  { %v102_v31 = vpop.eup %101  ;;  %v80_v32 = vmul.f32 20.0, %v78_v29  ;;  %v77_v33 = vmul.f32 %v100_v30, %v51_v28 }
  0xbf   :  { %83 = vst.msk [vmem:[%s186_s2] sm:$0xff] %vm82_vm1, %v80_v32  ;;  %v79_v34 = vmul.f32 %v102_v31, %v77_v33 }
  0xc1   :  { %v81_v35 = vmul.f32 20.0, %v79_v34 }
  0xc3   :  { %84 = vst.msk [vmem:[%s186_s2 + $0x8] sm:$0xff] %vm82_vm1, %v81_v35 }
  0xc4   :  { %89 = vsyncpa [#allocation3], 1 }
  0xc5   :  { %90 = vsyncpa [#allocation5], 1 }

</bundles_post_ra>
